<compile_context>
chip_gen: v6e
topology: v6e:2x2x1
jax: 0.10.0
libtpu: 0.0.40
codegen_flags: <defaults>
</compile_context>

<pallas_src>
import math
from functools import partial

import jax
import jax.numpy as jnp
from jax.experimental import pallas as pl
from jax.experimental.pallas import tpu as pltpu


def _round_up(a: int, b: int) -> int:
    return (a + b - 1) // b * b


def _pick_tm(m: int, cap: int):
    """Largest multiple of 8 <= cap that divides m (no padded rows -> no
    post-kernel copy); fall back to padding m if no such divisor exists."""
    cap = max(8, (min(cap, m) // 8) * 8)
    t = cap
    while t >= 8:
        if m % t == 0:
            return t, m
        t -= 8
    return cap, _round_up(m, cap)


def _proj_ln_kernel(p_ref, w_ref, prm_ref, o_ref, *, eps, e_true):
    # (TM, K) @ (K, Ep) on the MXU, f32 accumulation.
    acc = jnp.dot(p_ref[...], w_ref[...], preferred_element_type=jnp.float32)
    prm = prm_ref[...]
    acc = acc + prm[0:1, :]                       # conv bias (0 in padded cols)
    # LayerNorm over the TRUE embed dim.  Padded columns of acc are exactly 0
    # (padded weight cols / bias are 0), so sums over the full padded width
    # divided by e_true give correct statistics; the lane mask keeps the
    # centered values 0 in padded columns for the variance.
    inv_e = 1.0 / e_true
    mean = jnp.sum(acc, axis=-1, keepdims=True) * inv_e
    ctr = (acc - mean) * prm[3:4, :]              # lane mask -> padded cols 0
    var = jnp.sum(ctr * ctr, axis=-1, keepdims=True) * inv_e
    inv = jax.lax.rsqrt(var + eps)                # EUP rsqrt (free slot)
    y = ctr * inv * prm[1:2, :] + prm[2:3, :]     # gamma, beta (0 in padding)
    o_ref[...] = y.astype(o_ref.dtype)


def overlap_patch_embed(x, w, b, gamma, beta, *, patch_size=7, stride=4,
                        tm=8192, use_bf16=True, vmem_budget=20 * 1024 * 1024):
    """x: (B, C, H, W); w: (E, C, kh, kw); b, gamma, beta: (E,).
    Returns (tokens (B, Ho*Wo, E), Ho, Wo) — same as the PyTorch module."""
    B, C, H, W = x.shape
    E, _, kh, kw = w.shape
    pad = patch_size // 2
    Ho = (H + 2 * pad - kh) // stride + 1
    Wo = (W + 2 * pad - kw) // stride + 1
    M = B * Ho * Wo
    K = kh * kw * C
    Ep = _round_up(E, 128)                        # lane-dense output width

    cdtype = jnp.bfloat16 if use_bf16 else x.dtype

    # ---- im2col glue, built directly in bf16 (no extra f32 pass).  Columns
    # in (kh, kw, C) order, rows already in (b, ho, wo) row-major token order,
    # so no transpose of the expanded matrix is ever materialized.
    # TODO(synk): fuse this gather into the kernel via manual strided DMA.
    x_nhwc = jnp.transpose(x, (0, 2, 3, 1)).astype(cdtype)
    xp = jnp.pad(x_nhwc, ((0, 0), (pad, pad), (pad, pad), (0, 0)))
    cols = []
    for i in range(kh):
        for j in range(kw):
            cols.append(
                xp[:, i:i + stride * Ho:stride, j:j + stride * Wo:stride, :])
    pat = jnp.stack(cols, axis=3).reshape(M, K)   # (B*Ho*Wo, kh*kw*C), bf16

    # Weight (E, C, kh, kw) -> (kh, kw, C, E) -> (K, E): matches column order.
    # Zero-pad the output dim to Ep lanes.
    w2 = jnp.transpose(w.astype(cdtype), (2, 3, 1, 0)).reshape(K, E)
    if Ep != E:
        w2 = jnp.pad(w2, ((0, 0), (0, Ep - E)))

    # bias / gamma / beta / lane-mask packed into one resident (8, Ep) block.
    params = jnp.zeros((8, Ep), jnp.float32)
    params = params.at[0, :E].set(b.astype(jnp.float32))
    params = params.at[1, :E].set(gamma.astype(jnp.float32))
    params = params.at[2, :E].set(beta.astype(jnp.float32))
    params = params.at[3, :E].set(1.0)

    # ---- token-axis tile size:
    #  * fit double-buffered patches (bf16) + output (f32) + f32 temporaries
    #    inside the VMEM budget (safe on v7x's 32 MiB scoped default),
    #  * keep >= 4 tiles so v7x megacore has work for both TensorCores,
    #  * prefer a tile that divides M exactly (no padded rows, no output copy).
    bytes_per_row = 4 * K + 16 * Ep
    cap = min(tm,
              max(8, vmem_budget // bytes_per_row),
              max(8, _round_up(pl.cdiv(M, 4), 8)))
    tm, m_pad = _pick_tm(M, cap)
    if m_pad != M:
        pat = jnp.pad(pat, ((0, m_pad - M), (0, 0)))

    out = pl.pallas_call(
        partial(_proj_ln_kernel, eps=1e-5, e_true=float(E)),
        out_shape=jax.ShapeDtypeStruct((m_pad, Ep), x.dtype),
        grid=(m_pad // tm,),
        in_specs=[
            pl.BlockSpec((tm, K), lambda i: (i, 0)),   # patches: tiled over M
            pl.BlockSpec((K, Ep), lambda i: (0, 0)),   # weight: resident
            pl.BlockSpec((8, Ep), lambda i: (0, 0)),   # bias/gamma/beta/mask
        ],
        out_specs=pl.BlockSpec((tm, Ep), lambda i: (i, 0)),
        compiler_params=pltpu.CompilerParams(
            # Row tiles are independent -> megacore-shard them on v7x.
            dimension_semantics=("parallel",),
            vmem_limit_bytes=32 * 1024 * 1024),
    )(pat, w2, params)

    if m_pad != M:                                  # only if no exact divisor
        out = out[:M]
    tokens = out.reshape(B, Ho * Wo, Ep)            # view when m_pad == M
    if Ep != E:
        tokens = tokens[:, :, :E]                   # drop lane padding
    return tokens, Ho, Wo


def _reference(x, w, b, gamma, beta, *, patch_size=7, stride=4):
    pad = patch_size // 2
    y = jax.lax.conv_general_dilated(
        x, w, window_strides=(stride, stride),
        padding=((pad, pad), (pad, pad)),
        dimension_numbers=("NCHW", "OIHW", "NCHW"))
    y = y + b[None, :, None, None]
    B, E, Ho, Wo = y.shape
    t = y.reshape(B, E, Ho * Wo).transpose(0, 2, 1)
    mu = t.mean(-1, keepdims=True)
    var = ((t - mu) ** 2).mean(-1, keepdims=True)
    t = (t - mu) / jnp.sqrt(var + 1e-5) * gamma + beta
    return t, Ho, Wo


if __name__ == "__main__":
    # Small config consistent with the module: patch=7, stride=4, C=3, E=32.
    B, C, H, W = 2, 3, 16, 16
    E, P, S = 32, 7, 4

    key = jax.random.PRNGKey(0)
    k1, k2, k3 = jax.random.split(key, 3)
    x = jax.random.normal(k1, (B, C, H, W), dtype=jnp.float32)
    w = jax.random.normal(k2, (E, C, P, P), dtype=jnp.float32) * 0.05
    b = jax.random.normal(k3, (E,), dtype=jnp.float32) * 0.05
    gamma = jnp.ones((E,), dtype=jnp.float32)
    beta = jnp.zeros((E,), dtype=jnp.float32)

    out, Ho, Wo = overlap_patch_embed(x, w, b, gamma, beta,
                                      patch_size=P, stride=S)
    out = jax.block_until_ready(out)

    ref, Hr, Wr = _reference(x, w, b, gamma, beta, patch_size=P, stride=S)
    assert out.shape == (B, Ho * Wo, E) and (Ho, Wo) == (Hr, Wr)
    # bf16 matmul inputs (f32 accumulation) -> slightly looser tolerance.
    err = float(jnp.max(jnp.abs(out - ref)))
    assert jnp.allclose(out, ref, atol=5e-2, rtol=5e-2), err

    print("KERNEL_OK")
</pallas_src>

<mosaic_0001>
module attributes {stable_mosaic.version = 11 : i64} {
  func.func @_proj_ln_kernel(%arg0: i32, %arg1: memref<8x147xbf16, #tpu.memory_space<vmem>>, %arg2: memref<147x128xbf16, #tpu.memory_space<vmem>>, %arg3: memref<8x128xf32, #tpu.memory_space<vmem>>, %arg4: memref<8x128xf32, #tpu.memory_space<vmem>>) attributes {dimension_semantics = [#tpu.dimension_semantics<parallel>], iteration_bounds = array<i64: 4>, scalar_prefetch = 0 : i64, scratch_operands = 0 : i64, tpu.core_type = #tpu.core_type<tc>, window_params = [{transform_indices = @transform_0, window_bounds = array<i64: 8, 147>}, {pipeline_mode = #tpu.pipeline_mode<synchronous>, transform_indices = @transform_1, window_bounds = array<i64: 147, 128>}, {pipeline_mode = #tpu.pipeline_mode<synchronous>, transform_indices = @transform_2, window_bounds = array<i64: 8, 128>}, {transform_indices = @transform_3, window_bounds = array<i64: 8, 128>}]} {
    %c0 = arith.constant 0 : index
    %c0_0 = arith.constant 0 : index
    %0 = vector.load %arg1[%c0, %c0_0] : memref<8x147xbf16, #tpu.memory_space<vmem>>, vector<8x147xbf16>
    %c0_1 = arith.constant 0 : index
    %c0_2 = arith.constant 0 : index
    %1 = vector.load %arg2[%c0_1, %c0_2] : memref<147x128xbf16, #tpu.memory_space<vmem>>, vector<147x128xbf16>
    %cst = arith.constant dense<0.000000e+00> : vector<8x128xf32>
    %2 = tpu.matmul %0, %1, %cst {dimension_numbers = #tpu.dot_dimension_numbers<[1], [0], [0], [1], [0, 0, 1, 1], [], []>} : vector<8x147xbf16>, vector<147x128xbf16>, vector<8x128xf32> -> vector<8x128xf32>
    %c0_3 = arith.constant 0 : index
    %c0_4 = arith.constant 0 : index
    %3 = vector.load %arg3[%c0_3, %c0_4] : memref<8x128xf32, #tpu.memory_space<vmem>>, vector<8x128xf32>
    %4 = vector.extract_strided_slice %3 {offsets = [0, 0], sizes = [1, 128], strides = [1, 1]} : vector<8x128xf32> to vector<1x128xf32>
    %5 = vector.broadcast %4 : vector<1x128xf32> to vector<8x128xf32>
    %6 = arith.addf %2, %5 : vector<8x128xf32>
    %cst_5 = arith.constant dense<0.000000e+00> : vector<8xf32>
    %7 = vector.multi_reduction <add>, %6, %cst_5 [1] : vector<8x128xf32> to vector<8xf32>
    %8 = vector.shape_cast %7 : vector<8xf32> to vector<8x1xf32>
    %cst_6 = arith.constant 3.125000e-02 : f32
    %9 = vector.broadcast %cst_6 : f32 to vector<8x1xf32>
    %10 = arith.mulf %8, %9 : vector<8x1xf32>
    %11 = vector.broadcast %10 : vector<8x1xf32> to vector<8x128xf32>
    %12 = arith.subf %6, %11 : vector<8x128xf32>
    %13 = vector.extract_strided_slice %3 {offsets = [3, 0], sizes = [1, 128], strides = [1, 1]} : vector<8x128xf32> to vector<1x128xf32>
    %14 = vector.broadcast %13 : vector<1x128xf32> to vector<8x128xf32>
    %15 = arith.mulf %12, %14 : vector<8x128xf32>
    %16 = arith.mulf %15, %15 : vector<8x128xf32>
    %cst_7 = arith.constant dense<0.000000e+00> : vector<8xf32>
    %17 = vector.multi_reduction <add>, %16, %cst_7 [1] : vector<8x128xf32> to vector<8xf32>
    %18 = vector.shape_cast %17 : vector<8xf32> to vector<8x1xf32>
    %cst_8 = arith.constant 3.125000e-02 : f32
    %19 = vector.broadcast %cst_8 : f32 to vector<8x1xf32>
    %20 = arith.mulf %18, %19 : vector<8x1xf32>
    %cst_9 = arith.constant 9.99999974E-6 : f32
    %21 = vector.broadcast %cst_9 : f32 to vector<8x1xf32>
    %22 = arith.addf %20, %21 : vector<8x1xf32>
    %23 = math.rsqrt %22 : vector<8x1xf32>
    %24 = vector.broadcast %23 : vector<8x1xf32> to vector<8x128xf32>
    %25 = arith.mulf %15, %24 : vector<8x128xf32>
    %26 = vector.extract_strided_slice %3 {offsets = [1, 0], sizes = [1, 128], strides = [1, 1]} : vector<8x128xf32> to vector<1x128xf32>
    %27 = vector.broadcast %26 : vector<1x128xf32> to vector<8x128xf32>
    %28 = arith.mulf %25, %27 : vector<8x128xf32>
    %29 = vector.extract_strided_slice %3 {offsets = [2, 0], sizes = [1, 128], strides = [1, 1]} : vector<8x128xf32> to vector<1x128xf32>
    %30 = vector.broadcast %29 : vector<1x128xf32> to vector<8x128xf32>
    %31 = arith.addf %28, %30 : vector<8x128xf32>
    %c0_10 = arith.constant 0 : index
    %c0_11 = arith.constant 0 : index
    %32 = vector.load %arg4[%c0_10, %c0_11] : memref<8x128xf32, #tpu.memory_space<vmem>>, vector<8x128xf32>
    tpu.vector_store %arg4[%c0_10, %c0_11], %31 {strides = array<i32>} : memref<8x128xf32, #tpu.memory_space<vmem>>, vector<8x128xf32>,
    return
  }
  func.func @transform_0(%arg0: i32) -> (i32, i32) {
    %c0_i32 = arith.constant 0 : i32
    %c0_i32_0 = arith.constant 0 : i32
    return %arg0, %c0_i32 : i32, i32
  }
  func.func @transform_1(%arg0: i32) -> (i32, i32) {
    %c0_i32 = arith.constant 0 : i32
    %c0_i32_0 = arith.constant 0 : i32
    %c0_i32_1 = arith.constant 0 : i32
    return %c0_i32, %c0_i32_0 : i32, i32
  }
  func.func @transform_2(%arg0: i32) -> (i32, i32) {
    %c0_i32 = arith.constant 0 : i32
    %c0_i32_0 = arith.constant 0 : i32
    %c0_i32_1 = arith.constant 0 : i32
    return %c0_i32, %c0_i32_0 : i32, i32
  }
  func.func @transform_3(%arg0: i32) -> (i32, i32) {
    %c0_i32 = arith.constant 0 : i32
    %c0_i32_0 = arith.constant 0 : i32
    return %arg0, %c0_i32 : i32, i32
  }
}

</mosaic_0001>

<bundles_post_ra>
// kernel: tpu_custom_call.1
= control target key start
LH: loop header
LB: loop body
LE: loop exit
PB: predicated region body
PF: predicated region fallthrough
CT: control target
= control target key end

     0   :  { %8 = vsyncpa [#allocation3], 0  ;;  %s945_s0 = inlined_call_operand.hbm [shape: bf16[32,147], index: 0, kind: input, shape index: {}]   ;;  %s946_s1 = inlined_call_operand.hbm [shape: bf16[147,128], index: 1, kind: input, shape index: {}]   ;;  %s947_s2 = inlined_call_operand.hbm [shape: f32[8,128], index: 2, kind: input, shape index: {}]   ;;  %s948_s3 = inlined_call_operand.hbm [shape: f32[32,128], index: 3, kind: output, shape index: {}]  }
   0x1   :  { %10 = vsyncpa [#allocation3 + $0x1], 0 }
   0x2   :  { %11 = vsyncpa [#allocation6], 0 }
   0x3   :  { %12 = vsyncpa [#allocation4], 0 }
   0x4   :  { %14 = vsyncpa [#allocation4 + $0x1], 0  ;;  %s778_s12 = smov 0   ;;  %s780_s13 = smov 0  }
   0x5   :  { %s782_s14 = smov 0   ;;  %s784_s15 = smov 0  }
   0x6 LB: > { %s799_s16 = sadd.s32 4294967295, %s748_s15   ;;  %s484_s17 = sadd.s32 4294967294, %s748_s15   ;;  %s748_s15 = sphi %s784_s15, %s969_s15   ;;  %s744_s14 = sphi %s782_s14, %s968_s14   ;;  %s740_s13 = sphi %s780_s13, %s967_s13   ;;  %s736_s12 = sphi %s778_s12, %s966_s12  }
   0x7   : > { %p40_p0 = scmp.ne.s32.totalorder %s740_s13, %s736_s12  ;;  %p949_p1 = scmp.eq.s32.totalorder %s799_s16, 0 }
   0x8   : > { %p112_p3 = scmp.eq.s32.totalorder %s484_s17, 3  ;;  %p485_p5 = scmp.ge.s32.totalorder %s748_s15, 1 }
   0x9   : > { %p808_p4 = por %p949_p1, %p40_p0  ;;  %p119_p7 = scmp.lt.s32.totalorder %s748_s15, 5 }
   0xa   : > { %p813_p6 = por %p112_p3, %p40_p0  ;;  %s750_s21 = smov [#allocation5]  }
   0xb   : > { %s953_s18 = scalar_select %p808_p4, 1, 0 }
   0xc   : > { %s954_s19 = scalar_select %p813_p6, 1, 0 }
   0xd   : > { %p818_p8 = pnand %p485_p5, %p119_p7  ;;  %s131_s22 = sshll.u32 %s750_s21, 4  ;;  %s132_s22 = int_to_ptr.vmem [resolvable:$true] %s131_s22 }
   0xe   : > { %s751_s24 = smov [#allocation7]   ;;  %s611_s26 = scalar_lea.vmem %s132_s22, 1216 }
   0xf   : > { %s955_s20 = scalar_select %p818_p8, 1, 0 }
  0x10   : > { %p527_p9 = pneg %p818_p8  ;;  %s145_s25 = sshll.u32 %s751_s24, 4  ;;  %s146_s25 = int_to_ptr.vmem [resolvable:$true] %s145_s25 }
  0x11   : > { %p612_p12 = scmp.ne.s32.totalorder %s132_s22, %s611_s26  ;;  %p619_p3 = scmp.lt.s32.totalorder %s132_s22, %s132_s22 }
  0x12   : > { %p826_p10 = pnand %p527_p9, %p949_p1  ;;  %p620_p5 = scmp.lt.s32.totalorder %s611_s26, %s611_s26 }
  0x14   : > { %p602_p11 = pneg %p826_p10  ;;  %p621_p7 = por %p620_p5, %p619_p3 }
  0x16   : > { %p614_p13 = pnand %p612_p12, %p602_p11 }
  0x18   : > { %p615_p0 = pneg %p614_p13 }
  0x1a   : > { %p622_p9 = pnand %p621_p7, %p615_p0 }
  0x1c   : > { %625 = shalt.err (!%p622_p9)
}
  0x1d   : > { %s752_s27 = smov 64   ;;  %s753_s28 = smov 4  }
  0x1e   : > { %530 = dma.hbm_to_vmem [thread:$0]  (!%p826_p10), %s946_s1, 1216, %s132_s22, [#allocation6], %s752_s27, %s752_s27, %s753_s28  }
  0x1f   : > { %s637_s4 = scalar_lea.vmem %s146_s25, 128  ;;  %p645_p2 = scmp.lt.s32.totalorder %s146_s25, %s146_s25 }
  0x20   : > { %p638_p1 = scmp.ne.s32.totalorder %s146_s25, %s637_s4  ;;  %p646_p6 = scmp.lt.s32.totalorder %s637_s4, %s637_s4 }
  0x22   : > { %p640_p12 = pnand %p638_p1, %p602_p11  ;;  %p647_p3 = por %p646_p6, %p645_p2 }
  0x24   : > { %p641_p13 = pneg %p640_p12 }
  0x26   : > { %p648_p0 = pnand %p647_p3, %p641_p13 }
  0x28   : > { %651 = shalt.err (!%p648_p0)
}
  0x29   : > { %533 = dma.hbm_to_vmem [thread:$0]  (!%p826_p10), %s947_s2, 128, %s146_s25, [#allocation6]  }
  0x2a   : > { %s849_s7 = sadd.s32 1, %s748_s15   ;;  %s27_s8 = sadd.s32 1, %s744_s14 }
  0x2b   : > { %s24_s9 = ssub.s32 %s748_s15, %s849_s7  ;;  %p34_p1 = scmp.ne.s32.totalorder %s744_s14, %s740_s13 }
  0x2c   : > { %p25_p2 = scmp.eq.s32.totalorder %s24_s9, 0  ;;  %p35_p6 = scmp.eq.s32.totalorder %s748_s15, 0 }
  0x2d   : > { %p957_p11 = scmp.eq.s32.totalorder %s799_s16, 3  ;;  %p544_p7 = scmp.lt.s32.totalorder %s748_s15, 4 }
  0x2e   : > { %s865_s11 = scalar_select %p25_p2, %s744_s14, %s27_s8  }
  0x2f   : > { %p859_p5 = por %p957_p11, %p34_p1  ;;  %p36_p9 = por %p35_p6, %p34_p1 }
  0x30   : > { %s156_s17 = sand.u32 1, %s744_s14   ;;  %s514_s22 = sshll.u32 %s748_s15, 7 }
  0x31   : > { %s958_s10 = scalar_select %p859_p5, 1, 0 }
  0x32   : > { %s489_s21 = sshll.u32 %s156_s17, 3  ;;  %s872_s25 = scalar_lea.hbm %s945_s0, %s514_s22 }
  0x33   : > { %s160_s26 = scalar_lea.vmem [#allocation2], %s489_s21  ;;  %p874_p10 = pnand %p544_p7, %p36_p9 }
  0x34   : > { %s168_s27 = sshll.u32 %s160_s26, 4  ;;  %s157_s29 = scalar_lea.sflag [#allocation3], %s156_s17  ;;  %s169_s27 = int_to_ptr.vmem [resolvable:$true] %s168_s27 }
  0x35   : > { %s652_s30 = scalar_lea.hbm %s872_s25, 128  ;;  %p654_p13 = pneg %p874_p10 }
  0x36   : > { %p653_p12 = scmp.ne.s32.totalorder %s872_s25, %s652_s30  ;;  %s657_s6 = scalar_lea.hbm %s945_s0, 512 }
  0x37   : > { %p658_p1 = scmp.lt.s32.totalorder %s872_s25, %s945_s0  ;;  %p659_p2 = scmp.lt.s32.totalorder %s657_s6, %s652_s30 }
  0x38   : > { %p655_p3 = pnand %p654_p13, %p653_p12 }
  0x39   : > { %p660_p6 = por %p659_p2, %p658_p1 }
  0x3a   : > { %p656_p0 = pneg %p655_p3 }
  0x3c   : > { %p661_p11 = pnand %p660_p6, %p656_p0 }
  0x3e   : > { %664 = shalt.err (!%p661_p11)
}
  0x3f   : > { %s665_s21 = scalar_lea.vmem %s169_s27, 128  ;;  %s754_s17 = smov [#allocation2]  }
  0x40   : > { %p666_p7 = scmp.ne.s32.totalorder %s169_s27, %s665_s21  ;;  %s670_s22 = sshll.u32 %s754_s17, 4  ;;  %s671_s22 = int_to_ptr.vmem [resolvable:$false] %s670_s22 }
  0x41   : > { %s672_s23 = scalar_lea.vmem %s671_s22, 256  ;;  %p673_p12 = scmp.lt.s32.totalorder %s169_s27, %s671_s22 }
  0x42   : > { %p668_p9 = pnand %p666_p7, %p654_p13  ;;  %p674_p3 = scmp.lt.s32.totalorder %s672_s23, %s665_s21 }
  0x44   : > { %p669_p5 = pneg %p668_p9  ;;  %p675_p4 = por %p674_p3, %p673_p12 }
  0x46   : > { %p676_p8 = pnand %p675_p4, %p669_p5 }
  0x48   : > { %679 = shalt.err (!%p676_p8)
}
  0x49   : > { %537 = dma.hbm_to_vmem [thread:$0]  (!%p874_p10), %s872_s25, 128, %s169_s27, %s157_s29  }
  0x4a   : > { %p960_p0 = scmp.ne.s32.totalorder %s955_s20, 0 }
  0x4b   : > { %s895_s24 = sand.u32 (!%p960_p0), 1, %s740_s13   ;;  %p961_p4 = scmp.ne.s32.totalorder (!%p960_p0), %s953_s18, 0 }
  0x4c   : > { %177 = sbr.rel (%p960_p0) target bundleno = 642 (0x282), region = 32  ;;  %s493_s26 = sshll.u32 (!%p960_p0), %s895_s24, 3 }
  0x4d   : > { %s180_s30 = scalar_lea.sflag (!%p960_p0), [#allocation3], %s895_s24  ;;  %s183_s4 = scalar_lea.vmem (!%p960_p0), [#allocation2], %s493_s26 }
  0x51   : > { %723 = dma.done.wait (%p961_p4), %s180_s30, 128  }
  0x52   : > { %725 = vsyncadd (%p961_p4), %s180_s30, 4294967168  ;;  %p962_p8 = scmp.eq.s32.totalorder %s799_s16, 0 }
  0x54   : > { %727 = dma.done.wait (%p962_p8), [#allocation6], 1344   ;;  %p963_p5 = pmov %p962_p8 }
  0x55   : > { %v755_v0 = vmov 0   ;;  %v586_v1 = vld [vmem:[#allocation5 + $0x38] sm:$0xff]   ;;  %v587_v2 = vld [vmem:[#allocation5 + $0x30] sm:$0xff]   ;;  %v588_v3 = vld [vmem:[#allocation5 + $0x28] sm:$0xff]   ;;  %vm303_vm0 = vcmask 154624   ;;  %vm307_vm1 = vcmask 1040384   ;;  %v236_v18 = vlaneseq }
  0x56   : > { %729 = vsyncadd (%p963_p5), [#allocation6], 4294965952  ;;  %314 = vmatprep.subr.bf16.mxu0 %v755_v0  ;;  %v215_v4 = vld [vmem:[%s183_s4] sm:$0xff]  ;;  %v589_v5 = vld [vmem:[#allocation5 + $0x20] sm:$0xff]   ;;  %vm308_vm2 = vcmask 1041408   ;;  %v756_v10 = vmov 65535  }
  0x57   : > { %315 = vmatpush1.bf16.msra.mxu0 %v586_v1  ;;  %v498_v6 = vcombine.high %v215_v4, %v215_v4  ;;  %v590_v7 = vld [vmem:[#allocation5 + $0x18] sm:$0xff]   ;;  %v591_v8 = vld [vmem:[#allocation5 + $0x10] sm:$0xff]   ;;  %v592_v9 = vld [vmem:[#allocation5 + $0x8] sm:$0xff]   ;;  %v309_v11 = vsel %vm307_vm1, 4294967295, %v756_v10  ;;  %v497_v17 = vcombine.low %v215_v4, %v215_v4  ;;  %v237_v19 = vshrl.u32 %v236_v18, 7  ;;  %s511_s18 = sshll.u32 %s799_s16, 7 }
  0x58   : > { %316 = vmatprep.subr.bf16.mxu0 %v755_v0  ;;  %v593_v12 = vld [vmem:[#allocation5] sm:$0xff]   ;;  %v594_v13 = vld [vmem:[#allocation5 + $0x48] ss:$0 sps:$4 sm:$0x33]   ;;  %v310_v14 = vsel %vm308_vm2, %v309_v11, 0  ;;  %v235_v21 = vld [vmem:[#allocation7] sm:$0xff]  ;;  %s393_s29 = scalar_lea.hbm %s948_s3, %s511_s18 }
  0x59   : > { %509 = vmatprep.mubr.msk.bf16.mxu0 %vm303_vm0, %v498_v6  ;;  %v312_v15 = vand.u32 %v594_v13, %v310_v14  ;;  %v595_v16 = vld [vmem:[#allocation5 + $0x40] sm:$0xff]   ;;  %v238_v20 = vsub.s32 0, %v237_v19  ;;  %v360_v28 = vsub.s32 3, %v237_v19  ;;  %v372_v38 = vsub.s32 1, %v237_v19  ;;  %s213_s20 = scalar_lea.vmem [#allocation8], %s493_s26  ;;  %s382_s5 = scalar_lea.sflag [#allocation4], %s895_s24 }
  0x5a   : > { %v377_v39 = vsub.s32 2, %v237_v19  ;;  %s395_s25 = sshll.u32 %s213_s20, 4  ;;  %p964_p13 = scmp.ne.s32.totalorder %s958_s10, 0  ;;  %s396_s25 = int_to_ptr.vmem [resolvable:$true] %s395_s25 }
  0x5b   : > { %317 = vmatpush1.bf16.msra.mxu0 %v587_v2  ;;  %v239_v22 = vrot.slane %v235_v21, %v238_v20  ;;  %v361_v31 = vrot.slane %v235_v21, %v360_v28  ;;  %v373_v40 = vrot.slane %v235_v21, %v372_v38  ;;  %s680_s6 = scalar_lea.vmem %s396_s25, 128  ;;  %s757_s8 = smov [#allocation8]  }
  0x5c   : > { %318 = vmatprep.subr.bf16.mxu0 %v755_v0  ;;  %v378_v42 = vrot.slane %v235_v21, %v377_v39  ;;  %p681_p10 = scmp.ne.s32.totalorder %s396_s25, %s680_s6  ;;  %s684_s9 = sshll.u32 %s757_s8, 4  ;;  %s685_s9 = int_to_ptr.vmem [resolvable:$false] %s684_s9 }
  0x5d   : > { %s686_s16 = scalar_lea.vmem %s685_s9, 256  ;;  %p687_p6 = scmp.lt.s32.totalorder %s396_s25, %s685_s9 }
  0x5e   : > { %p682_p1 = pnand %p681_p10, %p964_p13  ;;  %p688_p11 = scmp.lt.s32.totalorder %s686_s16, %s680_s6 }
  0x5f   : > { %319 = vmatpush1.bf16.msra.mxu0 %v588_v3 }
  0x60   : > { %320 = vmatprep.subr.bf16.mxu0 %v755_v0  ;;  %p683_p2 = pneg %p682_p1  ;;  %p689_p7 = por %p688_p11, %p687_p6 }
  0x62   : > { %p690_p9 = pnand %p689_p7, %p683_p2 }
  0x63   : > { %321 = vmatpush1.bf16.msra.mxu0 %v589_v5 }
  0x64   : > { %322 = vmatprep.subr.bf16.mxu0 %v755_v0 }
  0x67   : > { %323 = vmatpush1.bf16.msra.mxu0 %v590_v7 }
  0x68   : > { %324 = vmatprep.subr.bf16.mxu0 %v755_v0 }
  0x6b   : > { %325 = vmatpush1.bf16.msra.mxu0 %v591_v8 }
  0x6c   : > { %326 = vmatprep.subr.bf16.mxu0 %v755_v0 }
  0x6f   : > { %327 = vmatpush1.bf16.msra.mxu0 %v592_v9 }
  0x70   : > { %328 = vmatprep.subr.bf16.mxu0 %v755_v0 }
  0x73   : > { %329 = vmatpush1.bf16.msra.mxu0 %v593_v12 }
  0x74   : > { %342 = vmatprep.subr.bf16.mxu0 %v755_v0 }
  0x77   : > { %343 = vmatpush2.bf16.msra.mxu0 %v312_v15 }
  0x78   : > { %344 = vmatprep.subr.bf16.mxu0 %v755_v0 }
  0x7b   : > { %345 = vmatpush2.bf16.msra.mxu0 %v595_v16 }
  0x7e   : > { %347 = vmatmul.mubr.bf16.vlgmr.msra.gmra.mxu0 %v497_v17 }
 0x13e   : > { %v348_v23 = vpop.f32.mrf.mxu0 }
 0x13f   : > { %v349_v24 = vadd.f32 %v348_v23, %v239_v22 }
 0x140   : > { %v350_v25 = vpop.f32.mrf.mxu0 }
 0x141   : > { %354 = vadd.xlane.f32.xlu0 %v349_v24 }
 0x142   : > { %v351_v26 = vpop.f32.mrf.mxu0 }
 0x144   : > { %v352_v27 = vpop.f32.mrf.mxu0 }
 0x1ca   : > { %v355_v29 = vpop.xlane.xlu0 %354 }
 0x1cb   : > { %v356_v30 = vmul.f32 0.03125, %v355_v29 }
 0x1cd   : > { %v357_v32 = vsub.f32 %v349_v24, %v356_v30 }
 0x1cf   : > { %v362_v33 = vmul.f32 %v361_v31, %v357_v32 }
 0x1d1   : > { %v363_v34 = vmul.f32 %v362_v33, %v362_v33 }
 0x1d3   : > { %364 = vadd.xlane.f32.xlu0 %v363_v34 }
 0x25c   : > { %v365_v35 = vpop.xlane.xlu0 %364 }
 0x25d   : > { %v366_v36 = vmul.f32 0.03125, %v365_v35 }
 0x25f   : > { %v367_v37 = vadd.f32 1e-05, %v366_v36 }
 0x261   : > { %598 = vrsqrt.f32 %v367_v37 }
 0x26e   : > { %v599_v41 = vpop.eup %598 }
 0x26f   : > { %v369_v43 = vmul.f32 %v599_v41, %v362_v33 }
 0x271   : > { %v374_v44 = vmul.f32 %v373_v40, %v369_v43 }
 0x273   : > { %v379_v45 = vadd.f32 %v378_v42, %v374_v44 }
 0x275   : > { %380 = vst [vmem:[%s213_s20] sm:$0xff] %v379_v45 }
 0x276   : > { %693 = shalt.err (!%p690_p9)
}
 0x277   : > { %s694_s21 = scalar_lea.hbm %s393_s29, 128  ;;  %s698_s23 = scalar_lea.hbm %s948_s3, 512 }
 0x278   : > { %p695_p12 = scmp.ne.s32.totalorder %s393_s29, %s694_s21  ;;  %p699_p4 = scmp.lt.s32.totalorder %s393_s29, %s948_s3 }
 0x279   : > { %p700_p8 = scmp.lt.s32.totalorder %s698_s23, %s694_s21 }
 0x27a   : > { %p696_p3 = pnand %p695_p12, %p964_p13 }
 0x27b   : > { %p701_p5 = por %p700_p8, %p699_p4 }
 0x27c   : > { %p697_p0 = pneg %p696_p3 }
 0x27e   : > { %p702_p10 = pnand %p701_p5, %p697_p0 }
 0x280   : > { %705 = shalt.err (!%p702_p10)
}
 0x281   : > { %525 = dma.vmem_to_hbm [thread:$0]  (%p964_p13), %s396_s25, 128, %s393_s29, %s382_s5  }
 0x282 PF: > { %p547_p1 = scmp.ge.s32.totalorder %s748_s15, 2  ;;  %s407_s30 = sand.u32 1, %s736_s12  }
 0x283   : > { %p965_p2 = scmp.ne.s32.totalorder %s954_s19, 0  ;;  %s408_s4 = scalar_lea.sflag [#allocation4], %s407_s30 }
 0x285   : > { %p539_p6 = pnand %p547_p1, %p965_p2 }
 0x287   : > { %p540_p11 = pneg %p539_p6 }
 0x289   : > { %731 = dma.done.wait (%p540_p11), %s408_s4, 128  }
 0x28a   : > { %733 = vsyncadd (%p540_p11), %s408_s4, 4294967168  ;;  %p17_p7 = scmp.ge.s32.totalorder %s849_s7, 6   ;;  %s966_s12 = smov %s740_s13 }
 0x28b   : > { %s967_s13 = smov %s744_s14  ;;  %s968_s14 = smov %s865_s11 }
 0x28c   : > { %s969_s15 = smov %s849_s7  ;;  %19 = sbr.rel (!%p17_p7) target bundleno = 6 (0x6), region = 85 }
 0x291   :  { %413 = vsyncpa [#allocation3], 1 }
 0x292   :  { %415 = vsyncpa [#allocation3 + $0x1], 1 }
 0x293   :  { %416 = vsyncpa [#allocation6], 1 }
 0x294   :  { %417 = vsyncpa [#allocation4], 1 }
 0x295   :  { %419 = vsyncpa [#allocation4 + $0x1], 1 }

</bundles_post_ra>
